<compile_context>
chip_gen: v5e
topology: v5e:2x2
jax: 0.10.0
libtpu: 0.0.40
codegen_flags: <defaults>
</compile_context>

<pallas_src>
import functools

import jax
import jax.numpy as jnp
from jax.experimental import pallas as pl
from jax.experimental.pallas import tpu as pltpu


def _pos_embed_kernel_eval(pos_ref, out_ref):
    """Pure broadcast copy: (TS, E) table tile -> (TB, TS, E) output slab."""
    out_ref[...] = jnp.broadcast_to(pos_ref[...][None, :, :], out_ref.shape)


def _pos_embed_kernel_train(pos_ref, bits_ref, out_ref, *, threshold: int, scale: float):
    """Inverted dropout (same mask for every batch row) + broadcast.

    pos_ref  : (TS, E) table tile
    bits_ref : (TS, E) uint16 random bits (shared across the whole batch)
    out_ref  : (TB, TS, E) output slab
    """
    # keep iff bits >= threshold; P(keep) = 1 - threshold/2^16 ~= 1 - p_drop.
    # Zero-extend to int32 for the compare (cheap VALU filler under the store DMA).
    keep = bits_ref[...].astype(jnp.int32) >= threshold
    masked = jnp.where(
        keep, pos_ref[...].astype(jnp.float32) * jnp.float32(scale), jnp.float32(0.0)
    ).astype(out_ref.dtype)
    out_ref[...] = jnp.broadcast_to(masked[None, :, :], out_ref.shape)


def _round_down_mult(x: int, m: int) -> int:
    return (x // m) * m


def learned_pos_embedding(
    x, pos_embedding, *, p_drop=0.1, training=False, rng_key=None, block_budget_bytes=4 << 20
):
    """Pallas implementation of LearnedPosEmbedding.forward.

    x:             (B, S, E) -- only its shape is used (like the PyTorch module)
    pos_embedding: (max_seq_len, E) learned table
    returns:       (B, S, E)
    """
    B, S, E = x.shape
    max_seq_len, emb = pos_embedding.shape
    assert emb == E and S <= max_seq_len
    assert 0.0 <= p_drop < 1.0, "p_drop must be in [0, 1)"
    # TODO(synk): if E is not a multiple of 128, reshape the output to (B, S*E) in
    # the wrapper for a lane-dense slab (avoids masked vst.msk partial stores).

    out_dtype = pos_embedding.dtype
    itemsize = jnp.dtype(out_dtype).itemsize

    # Slice the first S rows in the wrapper (cheap XLA slice) so the block shapes
    # can use the full array dims when they fit -> no (8,128) divisibility issues.
    pos_s = pos_embedding[:S]

    # ---- Tile sizing: target ~block_budget_bytes per output block -------------
    # Measured: ~1-4 MiB lane-dense blocks reach ~85-86% of HBM roofline and
    # amortize the ~0.35us/grid-step overhead.
    row_bytes = E * itemsize                      # one S-row of the output
    full_s_bytes = S * row_bytes                  # one batch element
    if full_s_bytes <= block_budget_bytes:
        ts = S                                    # full-S tile (no S grid axis work)
        tb = max(1, min(B, block_budget_bytes // max(full_s_bytes, 1)))
    else:
        # Single batch row exceeds the budget: tile the S axis instead (TS mult of 8).
        tb = 1
        ts = _round_down_mult(max(block_budget_bytes // max(row_bytes, 1), 8), 8)
        ts = min(ts, S)
        if ts < 8:                                # degenerate: tiny S, keep full dim
            ts = S

    grid = (pl.cdiv(B, tb), pl.cdiv(S, ts))       # ragged last blocks are fine

    apply_dropout = bool(training) and p_drop > 0.0

    if apply_dropout:
        if rng_key is None:
            raise ValueError("training=True with p_drop>0 requires an explicit rng_key")
        # One (S, E) uint16 mask shared by every batch row (dropout happens before
        # .repeat()).  Keep probability quantized to 2^-16 -- negligible for dropout.
        bits = jax.random.bits(rng_key, (S, E), dtype=jnp.uint16)
        threshold = min(int(round(p_drop * float(1 << 16))), (1 << 16) - 1)
        scale = 1.0 / (1.0 - p_drop)
        kernel = functools.partial(
            _pos_embed_kernel_train, threshold=threshold, scale=scale
        )
        in_specs = [
            pl.BlockSpec((ts, E), lambda b, s: (s, 0)),        # table tile
            pl.BlockSpec((ts, E), lambda b, s: (s, 0)),        # random bits tile
        ]
        operands = (pos_s, bits)
        bits_tile_bytes = ts * E * 2
        bytes_accessed = grid[0] * S * E * (itemsize + 2) + B * S * E * itemsize
    else:
        kernel = _pos_embed_kernel_eval
        in_specs = [pl.BlockSpec((ts, E), lambda b, s: (s, 0))]
        operands = (pos_s,)
        bits_tile_bytes = 0
        bytes_accessed = grid[0] * S * E * itemsize + B * S * E * itemsize

    # Scoped-VMEM request: double-buffered output block + input tiles + slack.
    out_block_bytes = tb * ts * E * itemsize
    pos_tile_bytes = ts * E * itemsize
    vmem_limit = 2 * (out_block_bytes + pos_tile_bytes + bits_tile_bytes) + (1 << 20)
    vmem_limit = int(min(max(vmem_limit, 4 << 20), 96 << 20))

    return pl.pallas_call(
        kernel,
        out_shape=jax.ShapeDtypeStruct((B, S, E), out_dtype),
        grid_spec=pltpu.PrefetchScalarGridSpec(
            num_scalar_prefetch=0,
            grid=grid,
            in_specs=in_specs,
            out_specs=pl.BlockSpec((tb, ts, E), lambda b, s: (b, s, 0)),
        ),
        compiler_params=pltpu.CompilerParams(
            # Each grid step is independent (no accumulator / pl.when state),
            # so both axes are safe to shard across TensorCores on v7x.
            dimension_semantics=("parallel", "parallel"),
            vmem_limit_bytes=vmem_limit,
        ),
        cost_estimate=pl.CostEstimate(
            flops=0, transcendentals=0, bytes_accessed=int(bytes_accessed)
        ),
    )(*operands)
    # TODO(synk): for extreme S*E an alternative near-peak structure is: compute the
    # masked (S,E) table once into VMEM scratch, out_specs=memory_space=pl.ANY, and
    # replicate it to each batch row with 2-4 in-flight pltpu.make_async_copy DMAs.


if __name__ == "__main__":
    key = jax.random.PRNGKey(0)
    k_pos, k_x, k_drop = jax.random.split(key, 3)

    B, S, E = 2, 8, 128          # batch, seq len used, embedding dim
    MAX_SEQ_LEN = 16
    P_DROP = 0.1

    # Deterministic "parameters" (nn.Parameter(torch.randn(max_seq_len, embedding_dim)))
    pos_embedding = jax.random.normal(k_pos, (MAX_SEQ_LEN, E), dtype=jnp.float32)
    # Input x -- only its shape matters for the forward pass.
    x = jax.random.normal(k_x, (B, S, E), dtype=jnp.float32)

    # Eval mode (dropout = identity): must match a plain broadcast of the table slice.
    out_eval = jax.block_until_ready(
        learned_pos_embedding(x, pos_embedding, p_drop=P_DROP, training=False)
    )
    ref_eval = jnp.broadcast_to(pos_embedding[None, :S, :], (B, S, E))
    assert out_eval.shape == (B, S, E)
    assert jnp.allclose(out_eval, ref_eval), "eval-mode mismatch"

    # Training mode: inverted dropout applied to the table, identical mask per batch.
    # (Mask realization differs from torch's RNG; semantics match.)
    out_train = jax.block_until_ready(
        learned_pos_embedding(
            x, pos_embedding, p_drop=P_DROP, training=True, rng_key=k_drop
        )
    )
    assert out_train.shape == (B, S, E)
    # Same dropout mask for every batch element (dropout happens before .repeat()).
    assert jnp.allclose(out_train[0], out_train[1]), "dropout mask differs across batch"
    # Surviving entries are scaled by 1/(1-p); dropped entries are exactly zero.
    kept = out_train[0] != 0.0
    assert jnp.allclose(
        out_train[0], jnp.where(kept, pos_embedding[:S] / (1.0 - P_DROP), 0.0)
    ), "training-mode dropout scaling mismatch"

    print("KERNEL_OK")
</pallas_src>

<mosaic_0001>
module attributes {stable_mosaic.version = 11 : i64} {
  func.func @_pos_embed_kernel_eval(%arg0: i32, %arg1: i32, %arg2: memref<8x128xf32, #tpu.memory_space<vmem>>, %arg3: memref<2x8x128xf32, #tpu.memory_space<vmem>>) attributes {dimension_semantics = [#tpu.dimension_semantics<parallel>, #tpu.dimension_semantics<parallel>], iteration_bounds = array<i64: 1, 1>, scalar_prefetch = 0 : i64, scratch_operands = 0 : i64, tpu.core_type = #tpu.core_type<tc>, window_params = [{transform_indices = @transform_0, window_bounds = array<i64: 8, 128>}, {transform_indices = @transform_1, window_bounds = array<i64: 2, 8, 128>}]} {
    %c0 = arith.constant 0 : index
    %c0_0 = arith.constant 0 : index
    %0 = vector.load %arg2[%c0, %c0_0] : memref<8x128xf32, #tpu.memory_space<vmem>>, vector<8x128xf32>
    %1 = vector.shape_cast %0 : vector<8x128xf32> to vector<1x8x128xf32>
    %2 = vector.shape_cast %1 : vector<1x8x128xf32> to vector<1x8x128xf32>
    %3 = vector.broadcast %2 : vector<1x8x128xf32> to vector<2x8x128xf32>
    %c0_1 = arith.constant 0 : index
    %c0_2 = arith.constant 0 : index
    %c0_3 = arith.constant 0 : index
    %4 = vector.load %arg3[%c0_1, %c0_2, %c0_3] : memref<2x8x128xf32, #tpu.memory_space<vmem>>, vector<2x8x128xf32>
    tpu.vector_store %arg3[%c0_1, %c0_2, %c0_3], %3 {strides = array<i32>} : memref<2x8x128xf32, #tpu.memory_space<vmem>>, vector<2x8x128xf32>,
    return
  }
  func.func @transform_0(%arg0: i32, %arg1: i32) -> (i32, i32) {
    %c0_i32 = arith.constant 0 : i32
    %c0_i32_0 = arith.constant 0 : i32
    return %arg1, %c0_i32 : i32, i32
  }
  func.func @transform_1(%arg0: i32, %arg1: i32) -> (i32, i32, i32) {
    %c0_i32 = arith.constant 0 : i32
    %c0_i32_0 = arith.constant 0 : i32
    return %arg0, %arg1, %c0_i32 : i32, i32, i32
  }
}

</mosaic_0001>

<bundles_post_ra>
// kernel: tpu_custom_call.1
= control target key start
LH: loop header
LB: loop body
LE: loop exit
PB: predicated region body
PF: predicated region fallthrough
CT: control target
= control target key end

     0   :  { %6 = vsyncpa [#allocation3], 0  ;;  %s121_s0 = inlined_call_operand.hbm [shape: f32[8,128], index: 0, kind: input, shape index: {}]   ;;  %s122_s1 = inlined_call_operand.hbm [shape: f32[2,8,128], index: 1, kind: output, shape index: {}]  }
   0x1   :  { %7 = vsyncpa [#allocation4], 0  ;;  %s13_s8 = sshll.u32 %s121_s0, 4  ;;  %s101_s9 = smov [#allocation2]   ;;  %s14_s8 = int_to_ptr.hbm [resolvable:$true] %s13_s8 }
   0x2   :  { %s15_s10 = sshll.u32 %s101_s9, 4  ;;  %s16_s10 = int_to_ptr.vmem [resolvable:$true] %s15_s10 }
   0x3   :  { %18 = dma.hbm_to_vmem [thread:$0]  %s14_s8, 128, %s16_s10, [#allocation3]  }
   0x4   :  { %97 = dma.done.wait [#allocation3], 128  }
   0x5   :  { %98 = vsyncadd [#allocation3], 4294967168  ;;  %s102_s11 = smov [#allocation5]   ;;  %s32_s15 = sshll.u32 %s122_s1, 4  ;;  %v23_v0 = vld [vmem:[#allocation2] sm:$0xff]  ;;  %s33_s15 = int_to_ptr.hbm [resolvable:$true] %s32_s15 }
   0x6   :  { %s30_s12 = sshll.u32 %s102_s11, 4  ;;  %24 = vst [vmem:[#allocation5] sm:$0xff] %v23_v0  ;;  %s103_s16 = smov 128   ;;  %s31_s12 = int_to_ptr.vmem [resolvable:$true] %s30_s12 }
   0x7   :  { %25 = vst [vmem:[#allocation5 + $0x8] sm:$0xff] %v23_v0  ;;  %s104_s0 = smov 8  }
   0x8   :  { %38 = dma.vmem_to_hbm [thread:$0]  %s31_s12, 256, %s33_s15, [#allocation4], %s103_s16, %s103_s16, %s104_s0  }
   0x9   :  { %99 = dma.done.wait [#allocation4], 256  }
   0xa   :  { %100 = vsyncadd [#allocation4], 4294967040 }
   0xb   :  { %43 = vsyncpa [#allocation3], 1 }
   0xc   :  { %44 = vsyncpa [#allocation4], 1 }

</bundles_post_ra>
